<compile_context>
chip_gen: v7x
topology: tpu7x:2x2x1
jax: 0.10.0
libtpu: 0.0.40
codegen_flags: <defaults>
</compile_context>

<pallas_src>
import jax
import jax.numpy as jnp
from jax.experimental import pallas as pl
from jax.experimental.pallas import tpu as pltpu


# --------------------------------------------------------------------------
# In-kernel helpers
# --------------------------------------------------------------------------
def _swap_pairs(x):
    """y[..., 2i] = x[..., 2i+1]; y[..., 2i+1] = x[..., 2i] (interleaved pair swap).

    Two lane rolls (XLU slot, off the VPU critical path) plus a parity select,
    done on the raw dtype (bf16 stays bf16).  Wrapped lanes are never selected
    because lane 0 is even and lane tC-1 is odd (tC is always even).
    """
    lane = jax.lax.broadcasted_iota(jnp.int32, x.shape, dimension=x.ndim - 1)
    even = (lane & 1) == 0
    tc = x.shape[-1]
    ax = x.ndim - 1                                   # pltpu.roll needs axis >= 0
    x_next = pltpu.roll(x, shift=tc - 1, axis=ax)     # x[..., (i+1) % tc]
    x_prev = pltpu.roll(x, shift=1, axis=ax)          # x[..., (i-1) % tc]
    return jnp.where(even, x_next, x_prev)


def _replicate_rows(f, x_rows):
    """Expand freqs rows (Frows, tC) so they line up with x rows (x_rows, tC)."""
    f_rows = f.shape[0]
    if f_rows in (1, x_rows):
        return f                                      # plain jnp broadcasting handles it
    reps = x_rows // f_rows
    # f_rows == 8 and f is f32: this is a tile-aligned sublane concatenate.
    return jnp.concatenate([f] * reps, axis=0)


# --------------------------------------------------------------------------
# Kernels
# --------------------------------------------------------------------------
def _rope_kernel_cs(x_ref, cos_ref, sin_ref, o_ref):
    """cos / sign-folded sin streamed from HBM (small head counts, H < 16)."""
    x = x_ref[...]                                    # (R, tC), raw dtype
    x_swap = _swap_pairs(x)
    cos = _replicate_rows(cos_ref[...], x.shape[0])   # f32
    sin = _replicate_rows(sin_ref[...], x.shape[0])   # f32, rotate_half sign folded in
    out = x.astype(jnp.float32) * cos + x_swap.astype(jnp.float32) * sin
    o_ref[...] = out.astype(o_ref.dtype)


def _rope_kernel_angles(x_ref, f_ref, o_ref):
    """Angles streamed; cos/sin computed once per block, amortised over heads (H >= 16)."""
    f = f_ref[...]                                    # (Frows, tC) f32 angles
    cos = jnp.cos(f)
    sin = jnp.sin(f)
    lane = jax.lax.broadcasted_iota(jnp.int32, f.shape, dimension=f.ndim - 1)
    sin = jnp.where((lane & 1) == 0, -sin, sin)       # fold rotate_half's minus sign
    x = x_ref[...]                                    # (R, tC), raw dtype
    x_swap = _swap_pairs(x)
    cos = _replicate_rows(cos, x.shape[0])
    sin = _replicate_rows(sin, x.shape[0])
    out = x.astype(jnp.float32) * cos + x_swap.astype(jnp.float32) * sin
    o_ref[...] = out.astype(o_ref.dtype)


# --------------------------------------------------------------------------
# Tiling / wrapper
# --------------------------------------------------------------------------
_VMEM_LIMIT_BYTES = 48 * 1024 * 1024    # < v7x's 64 MiB physical VMEM
_VMEM_BLOCK_BUDGET = 36 * 1024 * 1024   # target for pipelined blocks + f32 temporaries


def _vmem_bytes_per_lane_col(x_rows, x_itemsize, f_rows, n_f_arrays):
    io = 2 * 2 * x_rows * x_itemsize          # x in + out, double-buffered
    fq = 2 * n_f_arrays * f_rows * 4          # f32 cos/sin (or angles), double-buffered
    tmp = (2 * 4 + x_itemsize) * x_rows       # in-kernel f32 / raw-dtype temporaries
    return io + fq + tmp


def _pick_lane_tile(C, x_rows, x_itemsize, f_rows, n_f_arrays,
                    budget_bytes=_VMEM_BLOCK_BUDGET):
    per_col = _vmem_bytes_per_lane_col(x_rows, x_itemsize, f_rows, n_f_arrays)
    if C % 128 != 0:
        # Full-extent lane block is the only legal choice: fail loudly if it
        # cannot fit rather than asking Mosaic for an impossible allocation.
        if C * per_col > budget_bytes:
            raise ValueError(
                f"lane extent {C} is not a multiple of 128 and a full-extent block "
                f"(~{C * per_col / 2**20:.1f} MiB of VMEM) exceeds the "
                f"{budget_bytes / 2**20:.0f} MiB budget; pad N*D to a multiple of 128.")
        return C
    cap = min(C, max(128, (budget_bytes // per_col) // 128 * 128))
    best = 128
    for m in range(128, cap + 1, 128):
        if C % m == 0:
            best = m
    return best


def apply_vision_rope(x, freqs):
    """x: (B, H, N, D) f32 or bf16; freqs: (B, N, D) f32 rotation angles."""
    B, H, N, D = x.shape
    assert freqs.shape == (B, N, D)
    assert D % 2 == 0
    L = N * D
    x_itemsize = jnp.dtype(x.dtype).itemsize
    freqs = freqs.astype(jnp.float32)

    # Small head counts: in-kernel sin/cos amortises poorly over heads, so compute
    # cos and the sign-folded sin in the (fused) XLA op that already does the freqs
    # gather.  Large head counts: stream angles and compute cos/sin once per block.
    precompute_cs = H < 16

    # Layout selection.
    #  dense: sublane axis = H*8 (multiple of 8 for any H: no sublane padding,
    #         unmasked stores); lane axis = (N//8)*D.
    #  flat : previous layout (sublane = H, lane = N*D); used when the dense lane
    #         extent would not be a multiple of 128.
    dense = (N % 8 == 0) and (((N // 8) * D) % 128 == 0)
    if dense:
        C = (N // 8) * D
        xr = x.reshape(B, H * 8, C)               # contiguous reshape, no copy
        x_rows, f_rows = H * 8, 8
        f_shape = (B, 8, C)
    else:
        C = L
        xr = x.reshape(B, H, C)                   # contiguous reshape, no copy
        x_rows, f_rows = H, 1
        f_shape = (B, 1, C)

    if precompute_cs:
        sign = jnp.where((jnp.arange(D) % 2) == 0, -1.0, 1.0).astype(jnp.float32)
        cos = jnp.cos(freqs).reshape(f_shape)
        sin = (jnp.sin(freqs) * sign).reshape(f_shape)   # rotate_half sign folded in
        f_args = (cos, sin)
        kernel = _rope_kernel_cs
    else:
        f_args = (freqs.reshape(f_shape),)
        kernel = _rope_kernel_angles

    tC = _pick_lane_tile(C, x_rows, x_itemsize, f_rows, len(f_args))
    # v7x has two TensorCores: make sure the "parallel" axes have >= 2 steps total.
    if B == 1 and C // tC == 1 and C % 256 == 0:
        tC = C // 2
    n_tiles = C // tC

    x_spec = pl.BlockSpec((pl.Squeezed(), x_rows, tC), lambda b, l: (b, 0, l))
    f_spec = pl.BlockSpec((pl.Squeezed(), f_rows, tC), lambda b, l: (b, 0, l))

    out = pl.pallas_call(
        kernel,
        out_shape=jax.ShapeDtypeStruct(xr.shape, x.dtype),
        grid_spec=pltpu.PrefetchScalarGridSpec(
            num_scalar_prefetch=0,
            grid=(B, n_tiles),
            in_specs=[x_spec] + [f_spec] * len(f_args),
            out_specs=x_spec,
        ),
        compiler_params=pltpu.CompilerParams(
            dimension_semantics=("parallel", "parallel"),
            vmem_limit_bytes=_VMEM_LIMIT_BYTES,
        ),
    )(xr, *f_args)
    return out.reshape(B, H, N, D)


class VisionRotaryEmbeddingPallas:
    """JAX/Pallas port of VisionRotaryEmbedding with custom_freqs='normal'."""

    def __init__(self, head_dim: int, theta: int = 10000, max_cached_len: int = 1024):
        dim = head_dim // 2
        assert dim % 2 == 0
        self.dim = dim
        # freqs_h = freqs_w = 1 / theta ** (arange(0, dim, 2) / dim)
        inv_freq = 1.0 / theta ** (jnp.arange(0, dim, 2, dtype=jnp.float32) / dim)
        t = jnp.arange(max_cached_len, dtype=jnp.float32)
        # einsum('..., f -> ... f', arange(L), freqs) then repeat '(n r)', r=2
        cached = jnp.repeat(t[:, None] * inv_freq[None, :], 2, axis=-1)   # (L, dim)
        self.freqs_h_cached = cached
        self.freqs_w_cached = cached   # identical only because custom_freqs='normal'
        # jit so the gather + concat + cos/sin + sign-fold fuse into one XLA op
        # feeding the Pallas kernel.
        self._forward = jax.jit(self._forward_impl)

    def _forward_impl(self, x, grid):
        # TODO(synk): fuse this gather into the kernel via scalar-prefetched grid
        # indices (PrefetchScalarGridSpec) to drop the (B, N, D) freqs round trip.
        fh = self.freqs_h_cached[grid[:, 0]]              # (B, N, dim)
        fw = self.freqs_w_cached[grid[:, 1]]              # (B, N, dim)
        freqs = jnp.concatenate([fh, fw], axis=-1)        # (B, N, D)
        return apply_vision_rope(x, freqs)

    def __call__(self, x, grid):
        # x: (B, n_head, N, D);  grid: (B, 2, N) int
        return self._forward(x, grid)


# ---------------- pure-JAX reference for validation ----------------
def _rotate_half_ref(x):
    x1 = x[..., 0::2]
    x2 = x[..., 1::2]
    return jnp.stack([-x2, x1], axis=-1).reshape(x.shape)


def _forward_ref(rope, x, grid):
    fh = rope.freqs_h_cached[grid[:, 0]]
    fw = rope.freqs_w_cached[grid[:, 1]]
    freqs = jnp.concatenate([fh, fw], axis=-1)[:, None]   # (B, 1, N, D)
    xf = x.astype(jnp.float32)
    return xf * jnp.cos(freqs) + _rotate_half_ref(xf) * jnp.sin(freqs)


def _make_grid(B, Hs, Ws):
    gw = jnp.tile(jnp.arange(Ws, dtype=jnp.int32), Hs)        # [0 1 .. W-1 0 1 ..]
    gh = jnp.repeat(jnp.arange(Hs, dtype=jnp.int32), Ws)      # [0 0 .. 0 1 1 ..]
    g0 = jnp.stack([gw, gh], axis=0)                          # (2, N)
    return jnp.stack([g0 + b for b in range(B)], axis=0)      # (B, 2, N)


if __name__ == "__main__":
    head_dim = 32
    rope = VisionRotaryEmbeddingPallas(head_dim=head_dim, theta=10000,
                                       max_cached_len=1024)
    key = jax.random.PRNGKey(0)

    # Case 1: dense layout (sublane = H*8), wrapper-side cos/sin (H < 16).
    # Case 2: flat layout, in-kernel cos/sin (H >= 16), B=1 forces a 2-step grid.
    cases = [
        (2, 4, 8, 8, 1e-4),    # B, n_head, Hs, Ws, tol
        (1, 16, 4, 4, 1e-4),
    ]
    for i, (B, n_head, Hs, Ws, tol) in enumerate(cases):
        N, D = Hs * Ws, head_dim
        key, sub = jax.random.split(key)
        x = jax.random.normal(sub, (B, n_head, N, D), dtype=jnp.float32)
        grid = _make_grid(B, Hs, Ws)

        out = jax.block_until_ready(rope(x, grid))
        ref = _forward_ref(rope, x, grid)

        assert out.shape == (B, n_head, N, D)
        assert jnp.allclose(out.astype(jnp.float32), ref, rtol=tol, atol=tol), \
            f"case {i}: mismatch vs reference"

    print("KERNEL_OK")
</pallas_src>

<mosaic_0001>
module attributes {stable_mosaic.version = 11 : i64} {
  func.func @_rope_kernel_cs(%arg0: i32, %arg1: i32, %arg2: memref<1x32x256xf32, #tpu.memory_space<vmem>>, %arg3: memref<1x8x256xf32, #tpu.memory_space<vmem>>, %arg4: memref<1x8x256xf32, #tpu.memory_space<vmem>>, %arg5: memref<1x32x256xf32, #tpu.memory_space<vmem>>) attributes {dimension_semantics = [#tpu.dimension_semantics<parallel>, #tpu.dimension_semantics<parallel>], iteration_bounds = array<i64: 2, 1>, scalar_prefetch = 0 : i64, scratch_operands = 0 : i64, tpu.core_type = #tpu.core_type<tc>, window_params = [{transform_indices = @transform_0, window_bounds = array<i64: 1, 32, 256>}, {transform_indices = @transform_1, window_bounds = array<i64: 1, 8, 256>}, {transform_indices = @transform_2, window_bounds = array<i64: 1, 8, 256>}, {transform_indices = @transform_3, window_bounds = array<i64: 1, 32, 256>}]} {
    %c0 = arith.constant 0 : index
    %c0_0 = arith.constant 0 : index
    %c0_1 = arith.constant 0 : index
    %0 = vector.load %arg2[%c0, %c0_0, %c0_1] : memref<1x32x256xf32, #tpu.memory_space<vmem>>, vector<1x32x256xf32>
    %1 = vector.shape_cast %0 : vector<1x32x256xf32> to vector<32x256xf32>
    %2 = tpu.iota {dimensions = array<i32: 1>} : vector<32x256xi32>
    %c1_i32 = arith.constant 1 : i32
    %3 = vector.broadcast %c1_i32 : i32 to vector<32x256xi32>
    %4 = arith.andi %2, %3 : vector<32x256xi32>
    %c0_i32 = arith.constant 0 : i32
    %5 = vector.broadcast %c0_i32 : i32 to vector<32x256xi32>
    %6 = arith.cmpi eq, %4, %5 : vector<32x256xi32>
    %c255_i32 = arith.constant 255 : i32
    %7 = tpu.dynamic_rotate %1 by %c255_i32 dim 1 : vector<32x256xf32>, i32 -> vector<32x256xf32>
    %c1_i32_2 = arith.constant 1 : i32
    %8 = tpu.dynamic_rotate %1 by %c1_i32_2 dim 1 : vector<32x256xf32>, i32 -> vector<32x256xf32>
    %9 = arith.select %6, %7, %8 : vector<32x256xi1>, vector<32x256xf32>
    %c0_3 = arith.constant 0 : index
    %c0_4 = arith.constant 0 : index
    %c0_5 = arith.constant 0 : index
    %10 = vector.load %arg3[%c0_3, %c0_4, %c0_5] : memref<1x8x256xf32, #tpu.memory_space<vmem>>, vector<1x8x256xf32>
    %11 = vector.shape_cast %10 : vector<1x8x256xf32> to vector<8x256xf32>
    %12 = tpu.concatenate %11, %11, %11, %11 in 0 : vector<8x256xf32>, vector<8x256xf32>, vector<8x256xf32>, vector<8x256xf32> -> vector<32x256xf32>
    %c0_6 = arith.constant 0 : index
    %c0_7 = arith.constant 0 : index
    %c0_8 = arith.constant 0 : index
    %13 = vector.load %arg4[%c0_6, %c0_7, %c0_8] : memref<1x8x256xf32, #tpu.memory_space<vmem>>, vector<1x8x256xf32>
    %14 = vector.shape_cast %13 : vector<1x8x256xf32> to vector<8x256xf32>
    %15 = tpu.concatenate %14, %14, %14, %14 in 0 : vector<8x256xf32>, vector<8x256xf32>, vector<8x256xf32>, vector<8x256xf32> -> vector<32x256xf32>
    %16 = arith.mulf %1, %12 : vector<32x256xf32>
    %17 = arith.mulf %9, %15 : vector<32x256xf32>
    %18 = arith.addf %16, %17 : vector<32x256xf32>
    %c0_9 = arith.constant 0 : index
    %c0_10 = arith.constant 0 : index
    %c0_11 = arith.constant 0 : index
    %19 = vector.load %arg5[%c0_9, %c0_10, %c0_11] : memref<1x32x256xf32, #tpu.memory_space<vmem>>, vector<1x32x256xf32>
    %20 = vector.shape_cast %19 : vector<1x32x256xf32> to vector<32x256xf32>
    %21 = vector.shape_cast %18 : vector<32x256xf32> to vector<1x32x256xf32>
    tpu.vector_store %arg5[%c0_9, %c0_10, %c0_11], %21 {strides = array<i32>} : memref<1x32x256xf32, #tpu.memory_space<vmem>>, vector<1x32x256xf32>,
    return
  }
  func.func @transform_0(%arg0: i32, %arg1: i32) -> (i32, i32, i32) {
    %c0_i32 = arith.constant 0 : i32
    %c0_i32_0 = arith.constant 0 : i32
    return %arg0, %c0_i32, %arg1 : i32, i32, i32
  }
  func.func @transform_1(%arg0: i32, %arg1: i32) -> (i32, i32, i32) {
    %c0_i32 = arith.constant 0 : i32
    %c0_i32_0 = arith.constant 0 : i32
    return %arg0, %c0_i32, %arg1 : i32, i32, i32
  }
  func.func @transform_2(%arg0: i32, %arg1: i32) -> (i32, i32, i32) {
    %c0_i32 = arith.constant 0 : i32
    %c0_i32_0 = arith.constant 0 : i32
    return %arg0, %c0_i32, %arg1 : i32, i32, i32
  }
  func.func @transform_3(%arg0: i32, %arg1: i32) -> (i32, i32, i32) {
    %c0_i32 = arith.constant 0 : i32
    %c0_i32_0 = arith.constant 0 : i32
    return %arg0, %c0_i32, %arg1 : i32, i32, i32
  }
}

</mosaic_0001>

<bundles_post_ra>
// kernel: _forward_impl.1
= control target key start
LH: loop header
LB: loop body
LE: loop exit
PB: predicated region body
PF: predicated region fallthrough
CT: control target
= control target key end

     0   :  { %s605_s12 = smov 0   ;;  %s607_s13 = smov 0   ;;  %s730_s0 = inlined_call_operand.vmem [shape: f32[2,32,256], index: 0, kind: input, shape index: {}]   ;;  %s731_s1 = inlined_call_operand.vmem [shape: f32[2,8,256], index: 1, kind: input, shape index: {}]   ;;  %s732_s2 = inlined_call_operand.vmem [shape: f32[2,8,256], index: 2, kind: input, shape index: {}]   ;;  %s733_s3 = inlined_call_operand.vmem [shape: f32[2,32,256], index: 3, kind: output, shape index: {}]  }
   0x1   :  { %s609_s14 = smov 0  }
   0x2 LB: > { %s25_s15 = sadd.s32 1, %s577_s13  ;;  %p518_p0 = scmp.ge.s32.totalorder %s581_s14, 1  ;;  %s581_s14 = sphi %s609_s14, %s13_s14   ;;  %s577_s13 = sphi %s607_s13, %s739_s13   ;;  %s573_s12 = sphi %s605_s12, %s738_s12  }
   0x3   : > { %p27_p1 = scmp.ge.s32.totalorder %s25_s15, 2  ;;  %p192_p2 = scmp.lt.s32.totalorder %s581_s14, 3 }
   0x5   : > { %s741_s15 = smov (%p27_p1, %s25_s15), 0  ;;  %p193_p3 = pnand %p518_p0, %p192_p2 }
   0x6   : > { %p243_p4 = scmp.lt.s32.totalorder (!%p193_p3), %s573_s12, 1  ;;  %s583_s24 = smov (!%p193_p3), 127   ;;  %v290_v24 = vlaneseq (!%p193_p3) }
   0x7   : > { %196 = sbr.rel (%p193_p3) target bundleno = 171 (0xab), region = 32  ;;  %s584_s25 = smov (!%p193_p3), 1  }
   0x8   : > { %v291_v27 = vand.u32 (!%p193_p3), 127, %v290_v24 }
   0xa   : > { %v292_v28 = vadd.s32 (!%p193_p3), 128, %v291_v27  ;;  %v293_v31 = vand.u32 (!%p193_p3), 1, %v291_v27  ;;  %vm313_vm0 = vcmp.lt.s32.totalorder (!%p193_p3), %v291_v27, 127  ;;  %vm338_vm1 = vcmp.lt.s32.totalorder (!%p193_p3), %v291_v27, 1 }
   0xc   : > { %v294_v32 = vand.u32 (!%p193_p3), 1, %v292_v28  ;;  %vm658_vm2 = vcmp.eq.s32.totalorder (!%p193_p3), %v293_v31, 0 }
   0xe   : > { %s743_s12 = smov (!%p243_p4, %s573_s12), 1  ;;  %vm662_vm3 = vcmp.eq.s32.totalorder %v294_v32, 0 }
   0xf   : > { %s529_s16 = sshll.u32 %s743_s12, 6  ;;  %s530_s17 = sshll.u32 %s743_s12, 4 }
  0x10   : > { %s250_s20 = scalar_lea.vmem %s730_s0, %s529_s16  ;;  %s260_s23 = scalar_lea.vmem %s731_s1, %s530_s17 }
  0x11   : > { %v286_v0 = vld [vmem:[%s250_s20 + $0x20] sm:$0xff]  ;;  %v288_v5 = vld [vmem:[%s250_s20 + $0x30] sm:$0xff]  ;;  %v285_v9 = vld [vmem:[%s250_s20 + $0x18] sm:$0xff]  ;;  %s270_s28 = scalar_lea.vmem %s732_s2, %s530_s17  ;;  %s687_s4 = scalar_lea.vmem %s733_s3, %s529_s16 }
  0x12   : > { %v355_v1 = vld [vmem:[%s260_s23] sm:$0xff]  ;;  %301 = vrot.lane.b32.xlu1 %v286_v0, %s583_s24  ;;  %v284_v6 = vld [vmem:[%s250_s20 + $0x10] sm:$0xff]  ;;  %v356_v10 = vld [vmem:[%s260_s23 + $0x8] sm:$0xff] }
  0x13   : > { %v282_v2 = vld [vmem:[%s250_s20] sm:$0xff]  ;;  %v637_v3 = vmul.f32 %v355_v1, %v286_v0  ;;  %v641_v7 = vmul.f32 %v355_v1, %v288_v5  ;;  %v643_v8 = vmul.f32 %v355_v1, %v284_v6  ;;  %v283_v11 = vld [vmem:[%s250_s20 + $0x8] sm:$0xff]  ;;  %v645_v12 = vmul.f32 %v356_v10, %v285_v9  ;;  %v289_v14 = vld [vmem:[%s250_s20 + $0x38] sm:$0xff] }
  0x14   : > { %297 = vrot.lane.b32.xlu0 %v282_v2, %s583_s24  ;;  %v639_v4 = vmul.f32 %v355_v1, %v282_v2  ;;  %v647_v13 = vmul.f32 %v356_v10, %v283_v11  ;;  %v287_v15 = vld [vmem:[%s250_s20 + $0x28] sm:$0xff]  ;;  %v649_v16 = vmul.f32 %v356_v10, %v289_v14  ;;  %v357_v41 = vld [vmem:[%s270_s28] sm:$0xff] }
  0x15   : > { %v651_v17 = vmul.f32 %v356_v10, %v287_v15  ;;  %v358_v42 = vld [vmem:[%s270_s28 + $0x8] sm:$0xff] }
  0x16   : > { %303 = vrot.lane.b32.xlu1 %v288_v5, %s583_s24 }
  0x18   : > { %299 = vrot.lane.b32.xlu0 %v284_v6, %s583_s24 }
  0x1a   : > { %307 = vrot.lane.b32.xlu1 %v285_v9, %s583_s24 }
  0x1c   : > { %305 = vrot.lane.b32.xlu0 %v283_v11, %s583_s24 }
  0x1e   : > { %311 = vrot.lane.b32.xlu1 %v289_v14, %s583_s24 }
  0x20   : > { %309 = vrot.lane.b32.xlu0 %v287_v15, %s583_s24 }
  0x22   : > { %324 = vrot.lane.b32.xlu1 %v284_v6, %s584_s25 }
  0x24   : > { %322 = vrot.lane.b32.xlu0 %v282_v2, %s584_s25 }
  0x26   : > { %328 = vrot.lane.b32.xlu1 %v288_v5, %s584_s25 }
  0x28   : > { %326 = vrot.lane.b32.xlu0 %v286_v0, %s584_s25 }
  0x2a   : > { %332 = vrot.lane.b32.xlu1 %v285_v9, %s584_s25 }
  0x2c   : > { %330 = vrot.lane.b32.xlu0 %v283_v11, %s584_s25 }
  0x2e   : > { %336 = vrot.lane.b32.xlu1 %v289_v14, %s584_s25 }
  0x30   : > { %334 = vrot.lane.b32.xlu0 %v287_v15, %s584_s25 }
  0x84   : > { %v302_v18 = vpop.permute.xlu1 %301 }
  0x86   : > { %v298_v19 = vpop.permute.xlu0 %297 }
  0x88   : > { %v304_v20 = vpop.permute.xlu1 %303 }
  0x8a   : > { %v300_v21 = vpop.permute.xlu0 %299 }
  0x8c   : > { %v308_v22 = vpop.permute.xlu1 %307 }
  0x8d   : > { %v315_v37 = vsel %vm313_vm0, %v300_v21, %v308_v22  ;;  %v319_v38 = vsel %vm313_vm0, %v308_v22, %v300_v21 }
  0x8e   : > { %v306_v23 = vpop.permute.xlu0 %305 }
  0x8f   : > { %v314_v39 = vsel %vm313_vm0, %v298_v19, %v306_v23  ;;  %v318_v40 = vsel %vm313_vm0, %v306_v23, %v298_v19 }
  0x90   : > { %v312_v25 = vpop.permute.xlu1 %311 }
  0x91   : > { %v317_v57 = vsel %vm313_vm0, %v304_v20, %v312_v25  ;;  %v321_v58 = vsel %vm313_vm0, %v312_v25, %v304_v20 }
  0x92   : > { %v310_v26 = vpop.permute.xlu0 %309 }
  0x93   : > { %v316_v59 = vsel %vm313_vm0, %v302_v18, %v310_v26  ;;  %v320_v60 = vsel %vm313_vm0, %v310_v26, %v302_v18 }
  0x94   : > { %v325_v29 = vpop.permute.xlu1 %324 }
  0x96   : > { %v323_v30 = vpop.permute.xlu0 %322 }
  0x98   : > { %v329_v33 = vpop.permute.xlu1 %328 }
  0x9a   : > { %v327_v34 = vpop.permute.xlu0 %326 }
  0x9c   : > { %v333_v43 = vpop.permute.xlu1 %332 }
  0x9d   : > { %v340_v45 = vsel %vm338_vm1, %v325_v29, %v333_v43  ;;  %v344_v46 = vsel %vm338_vm1, %v333_v43, %v325_v29 }
  0x9e   : > { %v331_v44 = vpop.permute.xlu0 %330  ;;  %v349_v49 = vsel %vm658_vm2, %v315_v37, %v344_v46  ;;  %v350_v50 = vsel %vm662_vm3, %v319_v38, %v340_v45 }
  0x9f   : > { %v339_v47 = vsel %vm338_vm1, %v323_v30, %v331_v44  ;;  %v343_v48 = vsel %vm338_vm1, %v331_v44, %v323_v30  ;;  %v369_v53 = vmul.f32 %v357_v41, %v349_v49  ;;  %v370_v54 = vmul.f32 %v358_v42, %v350_v50 }
  0xa0   : > { %v347_v51 = vsel %vm658_vm2, %v314_v39, %v343_v48  ;;  %v348_v52 = vsel %vm662_vm3, %v318_v40, %v339_v47  ;;  %v337_v61 = vpop.permute.xlu1 %336 }
  0xa1   : > { %v367_v55 = vmul.f32 %v357_v41, %v347_v51  ;;  %v368_v56 = vmul.f32 %v358_v42, %v348_v52  ;;  %v377_v63 = vadd.f32 %v369_v53, %v643_v8  ;;  %v378_v0 = vadd.f32 %v370_v54, %v645_v12 }
  0xa2   : > { %v335_v62 = vpop.permute.xlu0 %334  ;;  %v342_v5 = vsel %vm338_vm1, %v329_v33, %v337_v61  ;;  %v346_v6 = vsel %vm338_vm1, %v337_v61, %v329_v33 }
  0xa3   : > { %v375_v1 = vadd.f32 %v367_v55, %v639_v4  ;;  %v376_v2 = vadd.f32 %v368_v56, %v647_v13  ;;  %v341_v9 = vsel %vm338_vm1, %v327_v34, %v335_v62  ;;  %v345_v10 = vsel %vm338_vm1, %v335_v62, %v327_v34  ;;  %385 = vst [vmem:[%s687_s4 + $0x10] sm:$0xff] %v377_v63 }
  0xa4   : > { %386 = vst [vmem:[%s687_s4 + $0x18] sm:$0xff] %v378_v0  ;;  %v353_v4 = vsel %vm658_vm2, %v317_v57, %v346_v6  ;;  %v354_v8 = vsel %vm662_vm3, %v321_v58, %v342_v5  ;;  %v351_v11 = vsel %vm658_vm2, %v316_v59, %v345_v10  ;;  %v352_v12 = vsel %vm662_vm3, %v320_v60, %v341_v9 }
  0xa5   : > { %383 = vst [vmem:[%s687_s4] sm:$0xff] %v375_v1  ;;  %384 = vst [vmem:[%s687_s4 + $0x8] sm:$0xff] %v376_v2  ;;  %v373_v13 = vmul.f32 %v357_v41, %v353_v4  ;;  %v374_v14 = vmul.f32 %v358_v42, %v354_v8  ;;  %v371_v15 = vmul.f32 %v357_v41, %v351_v11 }
  0xa6   : > { %v372_v18 = vmul.f32 %v358_v42, %v352_v12 }
  0xa7   : > { %v381_v19 = vadd.f32 %v373_v13, %v641_v7  ;;  %v382_v20 = vadd.f32 %v374_v14, %v649_v16  ;;  %v379_v21 = vadd.f32 %v371_v15, %v637_v3 }
  0xa8   : > { %v380_v22 = vadd.f32 %v372_v18, %v651_v17 }
  0xa9   : > { %389 = vst [vmem:[%s687_s4 + $0x30] sm:$0xff] %v381_v19  ;;  %390 = vst [vmem:[%s687_s4 + $0x38] sm:$0xff] %v382_v20 }
  0xaa   : > { %387 = vst [vmem:[%s687_s4 + $0x20] sm:$0xff] %v379_v21  ;;  %388 = vst [vmem:[%s687_s4 + $0x28] sm:$0xff] %v380_v22 }
  0xab PF: > { %s13_s14 = sadd.s32 1, %s581_s14   ;;  %s738_s12 = smov %s577_s13 }
  0xac   : > { %p10_p5 = scmp.ge.s32.totalorder %s13_s14, 4   ;;  %s739_s13 = smov %s741_s15 }
  0xae   :  { %12 = sbr.rel (!%p10_p5) target bundleno = 2 (0x2), region = 68 }

</bundles_post_ra>
